<compile_context>
chip_gen: v7x
topology: tpu7x:2x2x1
jax: 0.10.0
libtpu: 0.0.40
codegen_flags: <defaults>
</compile_context>

<pallas_src>
import functools

import jax
import jax.numpy as jnp
from jax.experimental import pallas as pl
from jax.experimental.pallas import tpu as pltpu

LANE = 128
SUBLANE = 8
MIN_GRID_STEPS = 4  # >= 2 steps per TensorCore on v7x keeps double-buffering live.


def _round_up(n, m):
    return ((n + m - 1) // m) * m


def _to_2d(x):
    """Emulate torch `x.squeeze()` for 4-D input, but never drop the batch axis."""
    if x.ndim == 4:
        squeeze_axes = tuple(i for i in range(1, 4) if x.shape[i] == 1)
        x = jnp.squeeze(x, axis=squeeze_axes)
    assert x.ndim == 2, f"expected (batch, features) after squeeze, got {x.shape}"
    return x


def _mlp_kernel(x_ref, w0_ref, w1_ref, w2_ref, wo_ref, b_ref, o_ref):
    """Fused 4-layer MLP forward for one batch tile.

    x_ref : (TB, D_in)                compute dtype (bf16 or f32), UNPADDED feature dim
    wK_ref: (in_k, out_pad_k)         compute dtype, pre-transposed [in, out]
    b_ref : (8, max_out_pad)          f32, row k = zero-padded bias of layer k
    o_ref : (TB, C_pad)               compute dtype, lane-dense (C_pad multiple of 128)
    """
    cdt = w0_ref.dtype
    b = b_ref[...]  # f32

    h = x_ref[...]

    # inpt + ReLU  (K = D_in, unpadded — MXU has huge slack, DMA bytes matter more)
    h = jnp.dot(h.astype(cdt), w0_ref[...], preferred_element_type=jnp.float32)
    h = jnp.maximum(h + b[0:1, : w0_ref.shape[1]], 0.0)

    # hidden[0] + ReLU
    h = jnp.dot(h.astype(cdt), w1_ref[...], preferred_element_type=jnp.float32)
    h = jnp.maximum(h + b[1:2, : w1_ref.shape[1]], 0.0)

    # hidden[1] + ReLU
    h = jnp.dot(h.astype(cdt), w2_ref[...], preferred_element_type=jnp.float32)
    h = jnp.maximum(h + b[2:3, : w2_ref.shape[1]], 0.0)

    # head (no activation)
    h = jnp.dot(h.astype(cdt), wo_ref[...], preferred_element_type=jnp.float32)
    o_ref[...] = (h + b[3:4, : wo_ref.shape[1]]).astype(o_ref.dtype)

    # TODO(synk): F.dropout path (self.dropout is not None) not implemented —
    # this config uses dropout=None, matching eval / no-dropout semantics.


def prepare_params(params, use_bf16=True):
    """Pad/cast parameters once, outside the jitted forward.

    params = ((w0,b0),(w1,b1),(w2,b2),(wo,bo)); w as [in, out] f32, b as [1, out] (or [out]) f32.
    Layer 0 keeps an UNPADDED fan_in (x is passed with its true feature width);
    later layers pad fan_in to the previous layer's lane-padded fan_out. All fan_out
    dims are rounded up to 128 (lane-dense). The 4 bias rows are stacked into a
    single (8, max_out_pad) f32 buffer.
    """
    cdt = jnp.bfloat16 if use_bf16 else jnp.float32
    ws, bs = [], []
    for li, (w, b) in enumerate(params):
        fan_in, fan_out = w.shape
        ip = fan_in if li == 0 else _round_up(fan_in, LANE)
        op = _round_up(fan_out, LANE)
        wp = jnp.zeros((ip, op), cdt).at[:fan_in, :fan_out].set(w.astype(cdt))
        bp = jnp.zeros((op,), jnp.float32).at[:fan_out].set(
            jnp.reshape(b, (-1,)).astype(jnp.float32))
        ws.append(wp)
        bs.append(bp)
    max_op = max(b.shape[0] for b in bs)
    bias_stack = jnp.zeros((_round_up(len(bs), SUBLANE), max_op), jnp.float32)
    for i, bp in enumerate(bs):
        bias_stack = bias_stack.at[i, : bp.shape[0]].set(bp)
    return tuple(ws), bias_stack


def _pick_tile(batch, tile_b):
    """Large tile for throughput, but keep >= MIN_GRID_STEPS grid steps when possible
    so both v7x TensorCores get >= 2 steps and prefetch/writeback overlap is live."""
    tile = max(SUBLANE, min(_round_up(tile_b, SUBLANE), _round_up(batch, SUBLANE)))
    while tile > SUBLANE and (_round_up(batch, tile) // tile) < MIN_GRID_STEPS:
        tile = max(SUBLANE, _round_up(tile // 2, SUBLANE))
    return tile


@functools.partial(jax.jit, static_argnames=("tile_b", "num_classes"))
def _dense_forward_impl(x, ws, bias_stack, *, tile_b, num_classes):
    B, D_in = x.shape
    w0, w1, w2, wo = ws
    assert w0.shape[0] == D_in, "layer-0 weight fan_in must match input feature dim"
    C_pad = wo.shape[1]
    cdt = w0.dtype

    tile = _pick_tile(B, tile_b)
    B_pad = _round_up(B, tile)
    grid = (B_pad // tile,)

    # Minimal wrapper-side work: cast to compute dtype (halves input bytes when bf16),
    # pad ONLY the batch axis and ONLY when the last tile is ragged. No feature pad.
    xp = x if x.dtype == cdt else x.astype(cdt)
    if B_pad != B:
        xp = jnp.pad(xp, ((0, B_pad - B), (0, 0)))

    def whole_spec(arr):
        return pl.BlockSpec(arr.shape, lambda i: (0, 0))

    out_pad = pl.pallas_call(
        _mlp_kernel,
        out_shape=jax.ShapeDtypeStruct((B_pad, C_pad), cdt),
        grid_spec=pltpu.PrefetchScalarGridSpec(
            num_scalar_prefetch=0,
            grid=grid,
            in_specs=[
                pl.BlockSpec((tile, D_in), lambda i: (i, 0)),
                whole_spec(w0), whole_spec(w1), whole_spec(w2), whole_spec(wo),
                whole_spec(bias_stack),
            ],
            out_specs=pl.BlockSpec((tile, C_pad), lambda i: (i, 0)),
        ),
        compiler_params=pltpu.CompilerParams(
            dimension_semantics=("parallel",),
            vmem_limit_bytes=32 * 1024 * 1024,
        ),
    )(xp, w0, w1, w2, wo, bias_stack)

    # Lane-dense padded slab -> real batch / class count. (Consumers that can take the
    # padded slab directly should skip this slice to save an HBM pass.)
    return out_pad[:B, :num_classes]


def dense_model_forward(x, prepared_params, num_classes, *, tile_b=512):
    """prepared_params = prepare_params(raw_params)."""
    ws, bias_stack = prepared_params
    x = _to_2d(x)
    return _dense_forward_impl(x, ws, bias_stack, tile_b=tile_b, num_classes=num_classes)


def init_dense_model_params(key, input_size, num_classes, hidden_sizes):
    """torch.nn.Linear-style init (U[-1/sqrt(fan_in), +1/sqrt(fan_in)]), weights as [in, out]."""
    dims = [(input_size, hidden_sizes[0])]
    for i in range(len(hidden_sizes)):
        dims.append((hidden_sizes[max(0, i - 1)], hidden_sizes[i]))
    dims.append((hidden_sizes[-1], num_classes))

    params = []
    for (fan_in, fan_out) in dims:
        key, kw, kb = jax.random.split(key, 3)
        bound = 1.0 / (fan_in ** 0.5)
        w = jax.random.uniform(kw, (fan_in, fan_out), jnp.float32, -bound, bound)
        b = jax.random.uniform(kb, (1, fan_out), jnp.float32, -bound, bound)
        params.append((w, b))
    return tuple(params)


def dense_model_ref(x, params):
    """Pure-JAX f32 reference."""
    x = _to_2d(x)
    (w0, b0), (w1, b1), (w2, b2), (wo, bo) = params
    h = jnp.maximum(x @ w0 + b0, 0.0)
    h = jnp.maximum(h @ w1 + b1, 0.0)
    h = jnp.maximum(h @ w2 + b2, 0.0)
    return h @ wo + bo


if __name__ == "__main__":
    input_size = 16
    hidden_sizes = (32, 32)
    num_classes = 4

    key = jax.random.PRNGKey(0)
    key, kx1, kx2 = jax.random.split(key, 3)
    params = init_dense_model_params(key, input_size, num_classes, hidden_sizes)

    # Case 1: 2-D input, batch 512. Tile auto-shrinks to 128 -> 4 grid steps
    # (>= 2 per TensorCore on v7x). bf16 MXU operands / bf16 output, f32 accumulation.
    x1 = jax.random.normal(kx1, (512, input_size), dtype=jnp.float32)
    prep_bf16 = prepare_params(params, use_bf16=True)
    out1 = jax.block_until_ready(dense_model_forward(x1, prep_bf16, num_classes, tile_b=512))
    ref1 = dense_model_ref(x1, params)
    assert out1.shape == (512, num_classes)
    assert jnp.allclose(out1.astype(jnp.float32), ref1, atol=5e-2, rtol=5e-2), \
        "bf16 path mismatch vs reference"

    # Case 2: small ragged 4-D input (exercises squeeze + batch-only zero padding),
    # f32 parity path with tight tolerance.
    x2 = jax.random.normal(kx2, (10, input_size, 1, 1), dtype=jnp.float32)
    prep_f32 = prepare_params(params, use_bf16=False)
    out2 = jax.block_until_ready(dense_model_forward(x2, prep_f32, num_classes, tile_b=512))
    ref2 = dense_model_ref(x2, params)
    assert out2.shape == (10, num_classes)
    assert jnp.allclose(out2, ref2, atol=1e-5, rtol=1e-5), "f32 path mismatch vs reference"

    print("KERNEL_OK")
</pallas_src>

<mosaic_0001>
module attributes {stable_mosaic.version = 11 : i64} {
  func.func @_mlp_kernel(%arg0: i32, %arg1: memref<128x16xbf16, #tpu.memory_space<vmem>>, %arg2: memref<16x128xbf16, #tpu.memory_space<vmem>>, %arg3: memref<128x128xbf16, #tpu.memory_space<vmem>>, %arg4: memref<128x128xbf16, #tpu.memory_space<vmem>>, %arg5: memref<128x128xbf16, #tpu.memory_space<vmem>>, %arg6: memref<8x128xf32, #tpu.memory_space<vmem>>, %arg7: memref<128x128xbf16, #tpu.memory_space<vmem>>) attributes {dimension_semantics = [#tpu.dimension_semantics<parallel>], iteration_bounds = array<i64: 4>, scalar_prefetch = 0 : i64, scratch_operands = 0 : i64, tpu.core_type = #tpu.core_type<tc>, window_params = [{transform_indices = @transform_0, window_bounds = array<i64: 128, 16>}, {pipeline_mode = #tpu.pipeline_mode<synchronous>, transform_indices = @transform_1, window_bounds = array<i64: 16, 128>}, {pipeline_mode = #tpu.pipeline_mode<synchronous>, transform_indices = @transform_2, window_bounds = array<i64: 128, 128>}, {pipeline_mode = #tpu.pipeline_mode<synchronous>, transform_indices = @transform_3, window_bounds = array<i64: 128, 128>}, {pipeline_mode = #tpu.pipeline_mode<synchronous>, transform_indices = @transform_4, window_bounds = array<i64: 128, 128>}, {pipeline_mode = #tpu.pipeline_mode<synchronous>, transform_indices = @transform_5, window_bounds = array<i64: 8, 128>}, {transform_indices = @transform_6, window_bounds = array<i64: 128, 128>}]} {
    %c0 = arith.constant 0 : index
    %c0_0 = arith.constant 0 : index
    %0 = vector.load %arg6[%c0, %c0_0] : memref<8x128xf32, #tpu.memory_space<vmem>>, vector<8x128xf32>
    %c0_1 = arith.constant 0 : index
    %c0_2 = arith.constant 0 : index
    %1 = vector.load %arg1[%c0_1, %c0_2] : memref<128x16xbf16, #tpu.memory_space<vmem>>, vector<128x16xbf16>
    %c0_3 = arith.constant 0 : index
    %c0_4 = arith.constant 0 : index
    %2 = vector.load %arg2[%c0_3, %c0_4] : memref<16x128xbf16, #tpu.memory_space<vmem>>, vector<16x128xbf16>
    %cst = arith.constant dense<0.000000e+00> : vector<128x128xf32>
    %3 = tpu.matmul %1, %2, %cst {dimension_numbers = #tpu.dot_dimension_numbers<[1], [0], [0], [1], [0, 0, 1, 1], [], []>} : vector<128x16xbf16>, vector<16x128xbf16>, vector<128x128xf32> -> vector<128x128xf32>
    %4 = vector.extract_strided_slice %0 {offsets = [0, 0], sizes = [1, 128], strides = [1, 1]} : vector<8x128xf32> to vector<1x128xf32>
    %5 = vector.broadcast %4 : vector<1x128xf32> to vector<128x128xf32>
    %6 = arith.addf %3, %5 : vector<128x128xf32>
    %cst_5 = arith.constant 0.000000e+00 : f32
    %7 = vector.broadcast %cst_5 : f32 to vector<128x128xf32>
    %8 = arith.maximumf %6, %7 : vector<128x128xf32>
    %9 = arith.truncf %8 : vector<128x128xf32> to vector<128x128xbf16>
    %c0_6 = arith.constant 0 : index
    %c0_7 = arith.constant 0 : index
    %10 = vector.load %arg3[%c0_6, %c0_7] : memref<128x128xbf16, #tpu.memory_space<vmem>>, vector<128x128xbf16>
    %cst_8 = arith.constant dense<0.000000e+00> : vector<128x128xf32>
    %11 = tpu.matmul %9, %10, %cst_8 {dimension_numbers = #tpu.dot_dimension_numbers<[1], [0], [0], [1], [0, 0, 1, 1], [], []>} : vector<128x128xbf16>, vector<128x128xbf16>, vector<128x128xf32> -> vector<128x128xf32>
    %12 = vector.extract_strided_slice %0 {offsets = [1, 0], sizes = [1, 128], strides = [1, 1]} : vector<8x128xf32> to vector<1x128xf32>
    %13 = vector.broadcast %12 : vector<1x128xf32> to vector<128x128xf32>
    %14 = arith.addf %11, %13 : vector<128x128xf32>
    %cst_9 = arith.constant 0.000000e+00 : f32
    %15 = vector.broadcast %cst_9 : f32 to vector<128x128xf32>
    %16 = arith.maximumf %14, %15 : vector<128x128xf32>
    %17 = arith.truncf %16 : vector<128x128xf32> to vector<128x128xbf16>
    %c0_10 = arith.constant 0 : index
    %c0_11 = arith.constant 0 : index
    %18 = vector.load %arg4[%c0_10, %c0_11] : memref<128x128xbf16, #tpu.memory_space<vmem>>, vector<128x128xbf16>
    %cst_12 = arith.constant dense<0.000000e+00> : vector<128x128xf32>
    %19 = tpu.matmul %17, %18, %cst_12 {dimension_numbers = #tpu.dot_dimension_numbers<[1], [0], [0], [1], [0, 0, 1, 1], [], []>} : vector<128x128xbf16>, vector<128x128xbf16>, vector<128x128xf32> -> vector<128x128xf32>
    %20 = vector.extract_strided_slice %0 {offsets = [2, 0], sizes = [1, 128], strides = [1, 1]} : vector<8x128xf32> to vector<1x128xf32>
    %21 = vector.broadcast %20 : vector<1x128xf32> to vector<128x128xf32>
    %22 = arith.addf %19, %21 : vector<128x128xf32>
    %cst_13 = arith.constant 0.000000e+00 : f32
    %23 = vector.broadcast %cst_13 : f32 to vector<128x128xf32>
    %24 = arith.maximumf %22, %23 : vector<128x128xf32>
    %25 = arith.truncf %24 : vector<128x128xf32> to vector<128x128xbf16>
    %c0_14 = arith.constant 0 : index
    %c0_15 = arith.constant 0 : index
    %26 = vector.load %arg5[%c0_14, %c0_15] : memref<128x128xbf16, #tpu.memory_space<vmem>>, vector<128x128xbf16>
    %cst_16 = arith.constant dense<0.000000e+00> : vector<128x128xf32>
    %27 = tpu.matmul %25, %26, %cst_16 {dimension_numbers = #tpu.dot_dimension_numbers<[1], [0], [0], [1], [0, 0, 1, 1], [], []>} : vector<128x128xbf16>, vector<128x128xbf16>, vector<128x128xf32> -> vector<128x128xf32>
    %28 = vector.extract_strided_slice %0 {offsets = [3, 0], sizes = [1, 128], strides = [1, 1]} : vector<8x128xf32> to vector<1x128xf32>
    %29 = vector.broadcast %28 : vector<1x128xf32> to vector<128x128xf32>
    %30 = arith.addf %27, %29 : vector<128x128xf32>
    %31 = arith.truncf %30 : vector<128x128xf32> to vector<128x128xbf16>
    %c0_17 = arith.constant 0 : index
    %c0_18 = arith.constant 0 : index
    %32 = vector.load %arg7[%c0_17, %c0_18] : memref<128x128xbf16, #tpu.memory_space<vmem>>, vector<128x128xbf16>
    tpu.vector_store %arg7[%c0_17, %c0_18], %31 {strides = array<i32>} : memref<128x128xbf16, #tpu.memory_space<vmem>>, vector<128x128xbf16>,
    return
  }
  func.func @transform_0(%arg0: i32) -> (i32, i32) {
    %c0_i32 = arith.constant 0 : i32
    %c0_i32_0 = arith.constant 0 : i32
    return %arg0, %c0_i32 : i32, i32
  }
  func.func @transform_1(%arg0: i32) -> (i32, i32) {
    %c0_i32 = arith.constant 0 : i32
    %c0_i32_0 = arith.constant 0 : i32
    %c0_i32_1 = arith.constant 0 : i32
    return %c0_i32, %c0_i32_0 : i32, i32
  }
  func.func @transform_2(%arg0: i32) -> (i32, i32) {
    %c0_i32 = arith.constant 0 : i32
    %c0_i32_0 = arith.constant 0 : i32
    %c0_i32_1 = arith.constant 0 : i32
    return %c0_i32, %c0_i32_0 : i32, i32
  }
  func.func @transform_3(%arg0: i32) -> (i32, i32) {
    %c0_i32 = arith.constant 0 : i32
    %c0_i32_0 = arith.constant 0 : i32
    %c0_i32_1 = arith.constant 0 : i32
    return %c0_i32, %c0_i32_0 : i32, i32
  }
  func.func @transform_4(%arg0: i32) -> (i32, i32) {
    %c0_i32 = arith.constant 0 : i32
    %c0_i32_0 = arith.constant 0 : i32
    %c0_i32_1 = arith.constant 0 : i32
    return %c0_i32, %c0_i32_0 : i32, i32
  }
  func.func @transform_5(%arg0: i32) -> (i32, i32) {
    %c0_i32 = arith.constant 0 : i32
    %c0_i32_0 = arith.constant 0 : i32
    %c0_i32_1 = arith.constant 0 : i32
    return %c0_i32, %c0_i32_0 : i32, i32
  }
  func.func @transform_6(%arg0: i32) -> (i32, i32) {
    %c0_i32 = arith.constant 0 : i32
    %c0_i32_0 = arith.constant 0 : i32
    return %arg0, %c0_i32 : i32, i32
  }
}

</mosaic_0001>

<bundles_post_ra>
// kernel: _dense_forward_impl.1
= control target key start
LH: loop header
LB: loop body
LE: loop exit
PB: predicated region body
PF: predicated region fallthrough
CT: control target
= control target key end

     0   :  { %s1552_s21 = smov 0   ;;  %s1720_s0 = inlined_call_operand.vmem [shape: bf16[512,16], index: 0, kind: input, shape index: {}]   ;;  %s1721_s1 = inlined_call_operand.vmem [shape: bf16[16,128], index: 1, kind: input, shape index: {}]   ;;  %s1722_s2 = inlined_call_operand.vmem [shape: bf16[128,128], index: 2, kind: input, shape index: {}]   ;;  %s1723_s3 = inlined_call_operand.vmem [shape: bf16[128,128], index: 3, kind: input, shape index: {}]   ;;  %s1724_s4 = inlined_call_operand.vmem [shape: bf16[128,128], index: 4, kind: input, shape index: {}]   ;;  %s1725_s5 = inlined_call_operand.vmem [shape: f32[8,128], index: 5, kind: input, shape index: {}]   ;;  %s1726_s6 = inlined_call_operand.vmem [shape: bf16[512,128], index: 6, kind: output, shape index: {}]  }
   0x1 LB: > { %s1150_s22 = sadd.s32 4294967295, %s1515_s21   ;;  %p1154_p0 = scmp.ge.s32.totalorder %s1515_s21, 1  ;;  %s1515_s21 = sphi %s1552_s21, %s16_s21  }
   0x2   : > { %p213_p1 = scmp.lt.s32.totalorder %s1515_s21, 5 }
   0x4   : > { %p214_p2 = pnand %p1154_p0, %p213_p1 }
   0x5   : > { %v1476_v0 = vld [vmem:[%s1721_s1] sm:$0xff] (!%p214_p2)   ;;  %s1155_s25 = sshll.u32 (!%p214_p2), %s1150_s22, 4  ;;  %v1486_v2 = vld [vmem:[%s1722_s2 + $0x8] sm:$0xff] (!%p214_p2)   ;;  %vm325_vm0 = vcmask (!%p214_p2), 130048   ;;  %v1487_v3 = vld [vmem:[%s1722_s2 + $0x10] sm:$0xff] (!%p214_p2)   ;;  %v275_v23 = vlaneseq (!%p214_p2) }
   0x6   : > { %217 = sbr.rel (%p214_p2) target bundleno = 928 (0x3a0), region = 44  ;;  %p244_p3 = scmp.lt.s32.totalorder (!%p214_p2), %s1155_s25, 63  ;;  %1338 = vmatprep.subr.bf16.mxu0 (!%p214_p2), %v1476_v0  ;;  %v1485_v1 = vld [vmem:[%s1722_s2] sm:$0xff] (!%p214_p2)   ;;  %v1488_v7 = vld [vmem:[%s1722_s2 + $0x18] sm:$0xff] (!%p214_p2)   ;;  %v1490_v11 = vld [vmem:[%s1722_s2 + $0x28] sm:$0xff] (!%p214_p2)  }
   0x7   : > { %1339 = vmatpush3.bf16.msra.mxu0 (!%p214_p2), %v1476_v0  ;;  %1356 = vmatprep.subr.bf16.mxu1 (!%p214_p2), %v1485_v1  ;;  %v1489_v8 = vld [vmem:[%s1722_s2 + $0x20] sm:$0xff] (!%p214_p2)   ;;  %v1491_v15 = vld [vmem:[%s1722_s2 + $0x30] sm:$0xff] (!%p214_p2)   ;;  %v1492_v16 = vld [vmem:[%s1722_s2 + $0x38] sm:$0xff] (!%p214_p2)   ;;  %v1621_v24 = vshrl.u32 (!%p214_p2), %v275_v23, 7 }
   0x8   : > { %1357 = vmatpush3.bf16.msra.mxu1 (!%p214_p2), %v1485_v1  ;;  %v1493_v17 = vld [vmem:[%s1723_s3] sm:$0xff] (!%p214_p2)   ;;  %v1494_v18 = vld [vmem:[%s1723_s3 + $0x8] sm:$0xff] (!%p214_p2)   ;;  %v1495_v19 = vld [vmem:[%s1723_s3 + $0x10] sm:$0xff] (!%p214_p2)  }
   0x9   : > { %1358 = vmatprep.subr.bf16.mxu1 (!%p214_p2), %v1486_v2  ;;  %1388 = vmatprep.subr.bf16.mxu0 (!%p214_p2), %v1493_v17  ;;  %v1496_v20 = vld [vmem:[%s1723_s3 + $0x18] sm:$0xff] (!%p214_p2)   ;;  %v1497_v21 = vld [vmem:[%s1723_s3 + $0x20] sm:$0xff] (!%p214_p2)   ;;  %v1498_v22 = vld [vmem:[%s1723_s3 + $0x28] sm:$0xff] (!%p214_p2)   ;;  %v277_v25 = vsub.s32 (!%p214_p2), 0, %v1621_v24 }
   0xa   : > { %v1627_v26 = vld [vmem:[%s1725_s5] sm:$0xff] (!%p214_p2)  ;;  %v1502_v23 = vld [vmem:[%s1724_s4 + $0x8] sm:$0xff] (!%p214_p2)  }
   0xb   : > { %v278_v27 = vrot.slane (!%p214_p2), %v1627_v26, %v277_v25  ;;  %v1503_v25 = vld [vmem:[%s1724_s4 + $0x10] sm:$0xff] (!%p214_p2)  }
   0xc   : > { %1359 = vmatpush3.bf16.msra.mxu1 (!%p214_p2), %v1486_v2 }
   0xd   : > { %s1728_s25 = smov (!%p244_p3, %s1155_s25), 63  ;;  %1360 = vmatprep.subr.bf16.mxu1 %v1487_v3 }
   0xe   : > { %s1156_s30 = sshll.u32 %s1728_s25, 2 }
   0xf   : > { %s247_s9 = scalar_lea.vmem %s1720_s0, %s1156_s30  ;;  %s1707_s16 = scalar_lea.vmem %s1726_s6, %s1156_s30 }
  0x10   : > { %v1477_v4 = vld [vmem:[%s247_s9] sm:$0xff]   ;;  %v1478_v5 = vld [vmem:[%s247_s9 + $0x8] sm:$0xff]   ;;  %v1479_v6 = vld [vmem:[%s247_s9 + $0x10] sm:$0xff]   ;;  %1361 = vmatpush3.bf16.msra.mxu1 %v1487_v3 }
  0x11   : > { %1340 = vmatprep.mubr.msk.bf16.mxu0 %vm325_vm0, %v1477_v4  ;;  %v1480_v9 = vld [vmem:[%s247_s9 + $0x18] sm:$0xff]   ;;  %1362 = vmatprep.subr.bf16.mxu1 %v1488_v7  ;;  %v1481_v10 = vld [vmem:[%s247_s9 + $0x20] sm:$0xff]   ;;  %v1482_v12 = vld [vmem:[%s247_s9 + $0x28] sm:$0xff]  }
  0x12   : > { %1341 = vmatmul.mubr.msk.bf16.vlgmr.msra.gmra.mrb[0].mxu0 %vm325_vm0, %v1478_v5  ;;  %v1483_v13 = vld [vmem:[%s247_s9 + $0x30] sm:$0xff]   ;;  %v1484_v14 = vld [vmem:[%s247_s9 + $0x38] sm:$0xff]  }
  0x13   : > { %1344 = vmatprep.mubr.msk.bf16.mxu0 %vm325_vm0, %v1479_v6  ;;  %1389 = vmatpush3.bf16.msra.mxu0 %v1493_v17 }
  0x14   : > { %1363 = vmatpush3.bf16.msra.mxu1 %v1488_v7  ;;  %1390 = vmatprep.subr.bf16.mxu0 %v1494_v18 }
  0x15   : > { %1364 = vmatprep.subr.bf16.mxu1 %v1489_v8 }
  0x17   : > { %1391 = vmatpush3.bf16.msra.mxu0 %v1494_v18 }
  0x18   : > { %1365 = vmatpush3.bf16.msra.mxu1 %v1489_v8  ;;  %1392 = vmatprep.subr.bf16.mxu0 %v1495_v19 }
  0x19   : > { %1366 = vmatprep.subr.bf16.mxu1 %v1490_v11 }
  0x1a   : > { %1345 = vmatmul.mubr.msk.bf16.gmra.mrb[4].mxu0 %vm325_vm0, %v1480_v9 }
  0x1b   : > { %1348 = vmatprep.mubr.msk.bf16.mxu0 %vm325_vm0, %v1481_v10  ;;  %1393 = vmatpush3.bf16.msra.mxu0 %v1495_v19 }
  0x1c   : > { %1367 = vmatpush3.bf16.msra.mxu1 %v1490_v11  ;;  %1394 = vmatprep.subr.bf16.mxu0 %v1496_v20 }
  0x1d   : > { %1368 = vmatprep.subr.bf16.mxu1 %v1491_v15 }
  0x1f   : > { %1395 = vmatpush3.bf16.msra.mxu0 %v1496_v20  ;;  %v1499_v20 = vld [vmem:[%s1723_s3 + $0x30] sm:$0xff]  }
  0x20   : > { %1369 = vmatpush3.bf16.msra.mxu1 %v1491_v15  ;;  %1396 = vmatprep.subr.bf16.mxu0 %v1497_v21 }
  0x21   : > { %1370 = vmatprep.subr.bf16.mxu1 %v1492_v16 }
  0x22   : > { %1349 = vmatmul.mubr.msk.bf16.gmra.mrb[8].mxu0 %vm325_vm0, %v1482_v12 }
  0x23   : > { %1352 = vmatprep.mubr.msk.bf16.mxu0 %vm325_vm0, %v1483_v13  ;;  %1397 = vmatpush3.bf16.msra.mxu0 %v1497_v21  ;;  %v1500_v21 = vld [vmem:[%s1723_s3 + $0x38] sm:$0xff]  }
  0x24   : > { %1371 = vmatpush3.bf16.msra.mxu1 %v1492_v16  ;;  %1398 = vmatprep.subr.bf16.mxu0 %v1498_v22 }
  0x27   : > { %1399 = vmatpush3.bf16.msra.mxu0 %v1498_v22  ;;  %v1501_v22 = vld [vmem:[%s1724_s4] sm:$0xff]  }
  0x28   : > { %1400 = vmatprep.subr.bf16.mxu0 %v1499_v20  ;;  %1452 = vmatprep.subr.bf16.mxu1 %v1501_v22 }
  0x2a   : > { %1353 = vmatmul.mubr.msk.bf16.gmra.mrb[12].mxu0 %vm325_vm0, %v1484_v14 }
  0x2b   : > { %1401 = vmatpush3.bf16.msra.mxu0 %v1499_v20 }
  0x2c   : > { %1402 = vmatprep.subr.bf16.mxu0 %v1500_v21 }
  0x2f   : > { %1403 = vmatpush3.bf16.msra.mxu0 %v1500_v21 }
  0x30   : > { %1420 = vmatprep.subr.bf16.mxu0 %v1501_v22 }
  0xe5   : > { %v1342_v28 = vpop.f32.mrb[0].mxu0 }
  0xe6   : > { %v393_v29 = vadd.f32 %v1342_v28, %v278_v27  ;;  %v384_v30 = vpop.f32.mrb[1].mxu0  ;;  %v1654_v28 = vld [vmem:[%s1724_s4 + $0x20] sm:$0xff]  }
  0xe7   : > { %v385_v31 = vadd.f32 %v384_v30, %v278_v27  ;;  %v1343_v32 = vpop.f32.mrb[2].mxu0  ;;  %v489_v30 = vsub.s32 1, %v1621_v24 }
  0xe8   : > { %v396_v33 = vadd.f32 %v1343_v32, %v278_v27  ;;  %v387_v34 = vpop.f32.mrb[3].mxu0  ;;  %v449_v36 = vmax.f32 %v393_v29, 0.0  ;;  %v1661_v29 = vld [vmem:[%s1724_s4 + $0x28] sm:$0xff]  }
  0xe9   : > { %v388_v35 = vadd.f32 %v387_v34, %v278_v27  ;;  %v447_v38 = vmax.f32 %v385_v31, 0.0  ;;  %v1668_v31 = vrot.slane %v1627_v26, %v489_v30 }
  0xea   : > { %v450_v37 = vmax.f32 %v396_v33, 0.0 }
  0xeb   : > { %v448_v39 = vmax.f32 %v388_v35, 0.0 }
  0xec   : > { %v464_v40 = vpack.c.bf16 %v450_v37, %v449_v36 }
  0xed   : > { %v1346_v41 = vpop.f32.mrb[4].mxu0  ;;  %v463_v42 = vpack.c.bf16 %v448_v39, %v447_v38 }
  0xee   : > { %v409_v43 = vadd.f32 %v1346_v41, %v278_v27  ;;  %v400_v44 = vpop.f32.mrb[5].mxu0 }
  0xef   : > { %v401_v45 = vadd.f32 %v400_v44, %v278_v27  ;;  %v1347_v46 = vpop.f32.mrb[6].mxu0  ;;  %1372 = vmatprep.mubr.bf16.mxu1 %v463_v42 }
  0xf0   : > { %v412_v47 = vadd.f32 %v1347_v46, %v278_v27  ;;  %v403_v48 = vpop.f32.mrb[7].mxu0  ;;  %1373 = vmatmul.mubr.bf16.vlgmr.msra.gmra.mrb[0].mxu1 %v464_v40  ;;  %v453_v50 = vmax.f32 %v409_v43, 0.0 }
  0xf1   : > { %v404_v49 = vadd.f32 %v403_v48, %v278_v27  ;;  %v451_v52 = vmax.f32 %v401_v45, 0.0  ;;  %1460 = vmatpush3.bf16.msra.mxu1 %v1501_v22 }
  0xf2   : > { %v454_v51 = vmax.f32 %v412_v47, 0.0  ;;  %1453 = vmatprep.subr.bf16.mxu1 %v1502_v23 }
  0xf3   : > { %v452_v53 = vmax.f32 %v404_v49, 0.0 }
  0xf4   : > { %v466_v54 = vpack.c.bf16 %v454_v51, %v453_v50 }
  0xf5   : > { %v465_v55 = vpack.c.bf16 %v452_v53, %v451_v52  ;;  %v1350_v56 = vpop.f32.mrb[8].mxu0  ;;  %1461 = vmatpush3.bf16.msra.mxu1 %v1502_v23 }
  0xf6   : > { %v425_v57 = vadd.f32 %v1350_v56, %v278_v27  ;;  %v416_v58 = vpop.f32.mrb[9].mxu0  ;;  %1454 = vmatprep.subr.bf16.mxu1 %v1503_v25 }
  0xf7   : > { %v417_v59 = vadd.f32 %v416_v58, %v278_v27  ;;  %v1351_v60 = vpop.f32.mrb[10].mxu0  ;;  %1376 = vmatprep.mubr.bf16.mxu1 %v465_v55 }
  0xf8   : > { %v428_v61 = vadd.f32 %v1351_v60, %v278_v27  ;;  %v419_v62 = vpop.f32.mrb[11].mxu0  ;;  %1377 = vmatmul.mubr.bf16.gmra.mrb[4].mxu1 %v466_v54  ;;  %v457_v0 = vmax.f32 %v425_v57, 0.0 }
  0xf9   : > { %v420_v63 = vadd.f32 %v419_v62, %v278_v27  ;;  %v455_v2 = vmax.f32 %v417_v59, 0.0  ;;  %1462 = vmatpush3.bf16.msra.mxu1 %v1503_v25 }
  0xfa   : > { %v458_v1 = vmax.f32 %v428_v61, 0.0 }
  0xfb   : > { %v456_v3 = vmax.f32 %v420_v63, 0.0 }
  0xfc   : > { %v468_v4 = vpack.c.bf16 %v458_v1, %v457_v0 }
  0xfd   : > { %v467_v5 = vpack.c.bf16 %v456_v3, %v455_v2  ;;  %v1354_v6 = vpop.f32.mrb[12].mxu0 }
  0xfe   : > { %v441_v7 = vadd.f32 %v1354_v6, %v278_v27  ;;  %v432_v8 = vpop.f32.mrb[13].mxu0 }
  0xff   : > { %v433_v9 = vadd.f32 %v432_v8, %v278_v27  ;;  %v1355_v10 = vpop.f32.mrb[14].mxu0  ;;  %1380 = vmatprep.mubr.bf16.mxu1 %v467_v5 }
 0x100   : > { %v444_v11 = vadd.f32 %v1355_v10, %v278_v27  ;;  %v435_v12 = vpop.f32.mrb[15].mxu0  ;;  %1381 = vmatmul.mubr.bf16.gmra.mrb[8].mxu1 %v468_v4  ;;  %v461_v14 = vmax.f32 %v441_v7, 0.0 }
 0x101   : > { %v436_v13 = vadd.f32 %v435_v12, %v278_v27  ;;  %v459_v16 = vmax.f32 %v433_v9, 0.0  ;;  %v1648_v27 = vld [vmem:[%s1724_s4 + $0x18] sm:$0xff]  }
 0x102   : > { %v462_v15 = vmax.f32 %v444_v11, 0.0  ;;  %1455 = vmatprep.subr.bf16.mxu1 %v1648_v27 }
 0x103   : > { %v460_v17 = vmax.f32 %v436_v13, 0.0  ;;  %1463 = vmatpush3.bf16.msra.mxu1 %v1648_v27 }
 0x104   : > { %v470_v18 = vpack.c.bf16 %v462_v15, %v461_v14  ;;  %1456 = vmatprep.subr.bf16.mxu1 %v1654_v28 }
 0x105   : > { %v469_v19 = vpack.c.bf16 %v460_v17, %v459_v16 }
 0x107   : > { %1384 = vmatprep.mubr.bf16.mxu1 %v469_v19  ;;  %1464 = vmatpush3.bf16.msra.mxu1 %v1654_v28 }
 0x108   : > { %1385 = vmatmul.mubr.bf16.gmra.mrb[12].mxu1 %v470_v18  ;;  %1457 = vmatprep.subr.bf16.mxu1 %v1661_v29 }
 0x10b   : > { %1465 = vmatpush3.bf16.msra.mxu1 %v1661_v29 }
 0x1c3   : > { %v1374_v32 = vpop.f32.mrb[0].mxu1 }
 0x1c4   : > { %v582_v33 = vadd.f32 %v1374_v32, %v1668_v31  ;;  %v573_v34 = vpop.f32.mrb[1].mxu1 }
 0x1c5   : > { %v574_v35 = vadd.f32 %v573_v34, %v1668_v31  ;;  %v1375_v36 = vpop.f32.mrb[2].mxu1 }
 0x1c6   : > { %v585_v37 = vadd.f32 %v1375_v36, %v1668_v31  ;;  %v576_v38 = vpop.f32.mrb[3].mxu1  ;;  %v638_v40 = vmax.f32 %v582_v33, 0.0 }
 0x1c7   : > { %v577_v39 = vadd.f32 %v576_v38, %v1668_v31  ;;  %v636_v42 = vmax.f32 %v574_v35, 0.0 }
 0x1c8   : > { %v639_v41 = vmax.f32 %v585_v37, 0.0 }
 0x1c9   : > { %v637_v43 = vmax.f32 %v577_v39, 0.0 }
 0x1ca   : > { %v653_v44 = vpack.c.bf16 %v639_v41, %v638_v40 }
 0x1cb   : > { %v652_v45 = vpack.c.bf16 %v637_v43, %v636_v42  ;;  %v1378_v46 = vpop.f32.mrb[4].mxu1 }
 0x1cc   : > { %v598_v47 = vadd.f32 %v1378_v46, %v1668_v31  ;;  %v589_v48 = vpop.f32.mrb[5].mxu1 }
 0x1cd   : > { %v590_v49 = vadd.f32 %v589_v48, %v1668_v31  ;;  %v1379_v50 = vpop.f32.mrb[6].mxu1  ;;  %1404 = vmatprep.mubr.bf16.mxu0 %v652_v45 }
 0x1ce   : > { %v601_v51 = vadd.f32 %v1379_v50, %v1668_v31  ;;  %v592_v52 = vpop.f32.mrb[7].mxu1  ;;  %1405 = vmatmul.mubr.bf16.vlgmr.msra.gmra.mrb[16].mxu0 %v653_v44  ;;  %v642_v54 = vmax.f32 %v598_v47, 0.0 }
 0x1cf   : > { %v593_v53 = vadd.f32 %v592_v52, %v1668_v31  ;;  %1421 = vmatpush3.bf16.msra.mxu0 %v1501_v22  ;;  %v640_v56 = vmax.f32 %v590_v49, 0.0 }
 0x1d0   : > { %v643_v55 = vmax.f32 %v601_v51, 0.0  ;;  %1422 = vmatprep.subr.bf16.mxu0 %v1502_v23 }
 0x1d1   : > { %v641_v57 = vmax.f32 %v593_v53, 0.0 }
 0x1d2   : > { %v655_v58 = vpack.c.bf16 %v643_v55, %v642_v54 }
 0x1d3   : > { %v654_v59 = vpack.c.bf16 %v641_v57, %v640_v56  ;;  %v1382_v60 = vpop.f32.mrb[8].mxu1  ;;  %1423 = vmatpush3.bf16.msra.mxu0 %v1502_v23 }
 0x1d4   : > { %v614_v61 = vadd.f32 %v1382_v60, %v1668_v31  ;;  %v605_v62 = vpop.f32.mrb[9].mxu1  ;;  %1424 = vmatprep.subr.bf16.mxu0 %v1503_v25 }
 0x1d5   : > { %v606_v63 = vadd.f32 %v605_v62, %v1668_v31  ;;  %v1383_v0 = vpop.f32.mrb[10].mxu1  ;;  %1408 = vmatprep.mubr.bf16.mxu0 %v654_v59 }
 0x1d6   : > { %v617_v1 = vadd.f32 %v1383_v0, %v1668_v31  ;;  %v608_v2 = vpop.f32.mrb[11].mxu1  ;;  %1409 = vmatmul.mubr.bf16.gmra.mrb[20].mxu0 %v655_v58  ;;  %v646_v4 = vmax.f32 %v614_v61, 0.0 }
 0x1d7   : > { %v609_v3 = vadd.f32 %v608_v2, %v1668_v31  ;;  %1425 = vmatpush3.bf16.msra.mxu0 %v1503_v25  ;;  %v644_v6 = vmax.f32 %v606_v63, 0.0  ;;  %v1507_v25 = vld [vmem:[%s1724_s4 + $0x30] sm:$0xff]  }
 0x1d8   : > { %v647_v5 = vmax.f32 %v617_v1, 0.0  ;;  %1426 = vmatprep.subr.bf16.mxu0 %v1648_v27  ;;  %1458 = vmatprep.subr.bf16.mxu1 %v1507_v25 }
 0x1d9   : > { %v645_v7 = vmax.f32 %v609_v3, 0.0  ;;  %1466 = vmatpush3.bf16.msra.mxu1 %v1507_v25 }
 0x1da   : > { %v657_v8 = vpack.c.bf16 %v647_v5, %v646_v4 }
 0x1db   : > { %v656_v9 = vpack.c.bf16 %v645_v7, %v644_v6  ;;  %v1386_v10 = vpop.f32.mrb[12].mxu1  ;;  %1427 = vmatpush3.bf16.msra.mxu0 %v1648_v27  ;;  %v1508_v27 = vld [vmem:[%s1724_s4 + $0x38] sm:$0xff]  }
 0x1dc   : > { %v630_v11 = vadd.f32 %v1386_v10, %v1668_v31  ;;  %v621_v12 = vpop.f32.mrb[13].mxu1  ;;  %1428 = vmatprep.subr.bf16.mxu0 %v1654_v28  ;;  %1459 = vmatprep.subr.bf16.mxu1 %v1508_v27 }
 0x1dd   : > { %v622_v13 = vadd.f32 %v621_v12, %v1668_v31  ;;  %v1387_v14 = vpop.f32.mrb[14].mxu1  ;;  %1412 = vmatprep.mubr.bf16.mxu0 %v656_v9  ;;  %1467 = vmatpush3.bf16.msra.mxu1 %v1508_v27 }
 0x1de   : > { %v633_v15 = vadd.f32 %v1387_v14, %v1668_v31  ;;  %v624_v16 = vpop.f32.mrb[15].mxu1  ;;  %1413 = vmatmul.mubr.bf16.gmra.mrb[24].mxu0 %v657_v8  ;;  %v650_v18 = vmax.f32 %v630_v11, 0.0 }
 0x1df   : > { %v625_v17 = vadd.f32 %v624_v16, %v1668_v31  ;;  %1429 = vmatpush3.bf16.msra.mxu0 %v1654_v28  ;;  %v648_v20 = vmax.f32 %v622_v13, 0.0  ;;  %v678_v28 = vsub.s32 2, %v1621_v24 }
 0x1e0   : > { %v651_v19 = vmax.f32 %v633_v15, 0.0  ;;  %1430 = vmatprep.subr.bf16.mxu0 %v1661_v29 }
 0x1e1   : > { %v649_v21 = vmax.f32 %v625_v17, 0.0 }
 0x1e2   : > { %v659_v22 = vpack.c.bf16 %v651_v19, %v650_v18 }
 0x1e3   : > { %v658_v23 = vpack.c.bf16 %v649_v21, %v648_v20  ;;  %1431 = vmatpush3.bf16.msra.mxu0 %v1661_v29  ;;  %v679_v29 = vrot.slane %v1627_v26, %v678_v28 }
 0x1e4   : > { %1432 = vmatprep.subr.bf16.mxu0 %v1507_v25 }
 0x1e5   : > { %1416 = vmatprep.mubr.bf16.mxu0 %v658_v23 }
 0x1e6   : > { %1417 = vmatmul.mubr.bf16.gmra.mrb[28].mxu0 %v659_v22  ;;  %v867_v22 = vsub.s32 3, %v1621_v24 }
 0x1e7   : > { %1433 = vmatpush3.bf16.msra.mxu0 %v1507_v25 }
 0x1e8   : > { %1434 = vmatprep.subr.bf16.mxu0 %v1508_v27  ;;  %v868_v23 = vrot.slane %v1627_v26, %v867_v22 }
 0x1eb   : > { %1435 = vmatpush3.bf16.msra.mxu0 %v1508_v27 }
 0x2a1   : > { %v1406_v30 = vpop.f32.mrb[16].mxu0 }
 0x2a2   : > { %v771_v31 = vadd.f32 %v1406_v30, %v679_v29  ;;  %v762_v32 = vpop.f32.mrb[17].mxu0 }
 0x2a3   : > { %v763_v33 = vadd.f32 %v762_v32, %v679_v29  ;;  %v1407_v34 = vpop.f32.mrb[18].mxu0 }
 0x2a4   : > { %v774_v35 = vadd.f32 %v1407_v34, %v679_v29  ;;  %v765_v36 = vpop.f32.mrb[19].mxu0  ;;  %v827_v38 = vmax.f32 %v771_v31, 0.0 }
 0x2a5   : > { %v766_v37 = vadd.f32 %v765_v36, %v679_v29  ;;  %v825_v40 = vmax.f32 %v763_v33, 0.0 }
 0x2a6   : > { %v828_v39 = vmax.f32 %v774_v35, 0.0 }
 0x2a7   : > { %v826_v41 = vmax.f32 %v766_v37, 0.0 }
 0x2a8   : > { %v842_v42 = vpack.c.bf16 %v828_v39, %v827_v38 }
 0x2a9   : > { %v841_v43 = vpack.c.bf16 %v826_v41, %v825_v40  ;;  %v1410_v44 = vpop.f32.mrb[20].mxu0 }
 0x2aa   : > { %v787_v45 = vadd.f32 %v1410_v44, %v679_v29  ;;  %v778_v46 = vpop.f32.mrb[21].mxu0 }
 0x2ab   : > { %v779_v47 = vadd.f32 %v778_v46, %v679_v29  ;;  %v1411_v48 = vpop.f32.mrb[22].mxu0  ;;  %1436 = vmatprep.mubr.bf16.mxu0 %v841_v43 }
 0x2ac   : > { %v790_v49 = vadd.f32 %v1411_v48, %v679_v29  ;;  %v781_v50 = vpop.f32.mrb[23].mxu0  ;;  %1437 = vmatmul.mubr.bf16.vlgmr.msra.gmra.mrb[32].mxu0 %v842_v42  ;;  %v831_v52 = vmax.f32 %v787_v45, 0.0 }
 0x2ad   : > { %v782_v51 = vadd.f32 %v781_v50, %v679_v29  ;;  %v829_v54 = vmax.f32 %v779_v47, 0.0 }
 0x2ae   : > { %v832_v53 = vmax.f32 %v790_v49, 0.0 }
 0x2af   : > { %v830_v55 = vmax.f32 %v782_v51, 0.0 }
 0x2b0   : > { %v844_v56 = vpack.c.bf16 %v832_v53, %v831_v52 }
 0x2b1   : > { %v843_v57 = vpack.c.bf16 %v830_v55, %v829_v54  ;;  %v1414_v58 = vpop.f32.mrb[24].mxu0 }
 0x2b2   : > { %v803_v59 = vadd.f32 %v1414_v58, %v679_v29  ;;  %v794_v60 = vpop.f32.mrb[25].mxu0 }
 0x2b3   : > { %v795_v61 = vadd.f32 %v794_v60, %v679_v29  ;;  %v1415_v62 = vpop.f32.mrb[26].mxu0  ;;  %1440 = vmatprep.mubr.bf16.mxu1 %v843_v57 }
 0x2b4   : > { %v806_v63 = vadd.f32 %v1415_v62, %v679_v29  ;;  %v797_v0 = vpop.f32.mrb[27].mxu0  ;;  %1441 = vmatmul.mubr.bf16.vlgmr.msra.gmra.mrb[16].mxu1 %v844_v56  ;;  %v835_v2 = vmax.f32 %v803_v59, 0.0 }
 0x2b5   : > { %v798_v1 = vadd.f32 %v797_v0, %v679_v29  ;;  %v833_v4 = vmax.f32 %v795_v61, 0.0 }
 0x2b6   : > { %v836_v3 = vmax.f32 %v806_v63, 0.0 }
 0x2b7   : > { %v834_v5 = vmax.f32 %v798_v1, 0.0 }
 0x2b8   : > { %v846_v6 = vpack.c.bf16 %v836_v3, %v835_v2 }
 0x2b9   : > { %v845_v7 = vpack.c.bf16 %v834_v5, %v833_v4  ;;  %v1418_v8 = vpop.f32.mrb[28].mxu0 }
 0x2ba   : > { %v819_v9 = vadd.f32 %v1418_v8, %v679_v29  ;;  %v810_v10 = vpop.f32.mrb[29].mxu0 }
 0x2bb   : > { %v811_v11 = vadd.f32 %v810_v10, %v679_v29  ;;  %v1419_v12 = vpop.f32.mrb[30].mxu0  ;;  %1444 = vmatprep.mubr.bf16.mxu1 %v845_v7 }
 0x2bc   : > { %v822_v13 = vadd.f32 %v1419_v12, %v679_v29  ;;  %v813_v14 = vpop.f32.mrb[31].mxu0  ;;  %1445 = vmatmul.mubr.bf16.gmra.mrb[20].mxu1 %v846_v6  ;;  %v839_v16 = vmax.f32 %v819_v9, 0.0 }
 0x2bd   : > { %v814_v15 = vadd.f32 %v813_v14, %v679_v29  ;;  %v837_v18 = vmax.f32 %v811_v11, 0.0 }
 0x2be   : > { %v840_v17 = vmax.f32 %v822_v13, 0.0 }
 0x2bf   : > { %v838_v19 = vmax.f32 %v814_v15, 0.0 }
 0x2c0   : > { %v848_v20 = vpack.c.bf16 %v840_v17, %v839_v16 }
 0x2c1   : > { %v847_v21 = vpack.c.bf16 %v838_v19, %v837_v18 }
 0x2c3   : > { %1448 = vmatprep.mubr.bf16.mxu1 %v847_v21 }
 0x2c4   : > { %1449 = vmatmul.mubr.bf16.gmra.mrb[24].mxu1 %v848_v20 }
 0x37f   : > { %v1438_v25 = vpop.f32.mrb[32].mxu0 }
 0x380   : > { %v951_v27 = vpop.f32.mrb[33].mxu0  ;;  %v960_v30 = vadd.f32 %v1438_v25, %v868_v23 }
 0x381   : > { %v1439_v28 = vpop.f32.mrb[34].mxu0  ;;  %v952_v29 = vadd.f32 %v951_v27, %v868_v23 }
 0x382   : > { %v963_v31 = vadd.f32 %v1439_v28, %v868_v23  ;;  %v954_v32 = vpop.f32.mrb[35].mxu0 }
 0x383   : > { %v955_v33 = vadd.f32 %v954_v32, %v868_v23 }
 0x384   : > { %v1242_v24 = vpack.c.bf16 %v963_v31, %v960_v30 }
 0x385   : > { %v1237_v26 = vpack.c.bf16 %v955_v33, %v952_v29 }
 0x386   : > { %1274 = vst [vmem:[%s1707_s16 + $0x8] sm:$0xff] %v1242_v24  }
 0x387   : > { %1238 = vst [vmem:[%s1707_s16] sm:$0xff] %v1237_v26   ;;  %v1442_v34 = vpop.f32.mrb[16].mxu1 }
 0x388   : > { %v967_v35 = vpop.f32.mrb[17].mxu1  ;;  %v976_v37 = vadd.f32 %v1442_v34, %v868_v23 }
 0x389   : > { %v1443_v36 = vpop.f32.mrb[18].mxu1  ;;  %v968_v40 = vadd.f32 %v967_v35, %v868_v23 }
 0x38a   : > { %v979_v38 = vadd.f32 %v1443_v36, %v868_v23  ;;  %v970_v39 = vpop.f32.mrb[19].mxu1 }
 0x38b   : > { %v971_v41 = vadd.f32 %v970_v39, %v868_v23 }
 0x38c   : > { %v1252_v42 = vpack.c.bf16 %v979_v38, %v976_v37 }
 0x38d   : > { %v1247_v43 = vpack.c.bf16 %v971_v41, %v968_v40 }
 0x38e   : > { %1276 = vst [vmem:[%s1707_s16 + $0x18] sm:$0xff] %v1252_v42  }
 0x38f   : > { %1275 = vst [vmem:[%s1707_s16 + $0x10] sm:$0xff] %v1247_v43   ;;  %v1446_v44 = vpop.f32.mrb[20].mxu1 }
 0x390   : > { %v983_v45 = vpop.f32.mrb[21].mxu1  ;;  %v992_v47 = vadd.f32 %v1446_v44, %v868_v23 }
 0x391   : > { %v1447_v46 = vpop.f32.mrb[22].mxu1  ;;  %v984_v50 = vadd.f32 %v983_v45, %v868_v23 }
 0x392   : > { %v995_v48 = vadd.f32 %v1447_v46, %v868_v23  ;;  %v986_v49 = vpop.f32.mrb[23].mxu1 }
 0x393   : > { %v987_v51 = vadd.f32 %v986_v49, %v868_v23 }
 0x394   : > { %v1262_v52 = vpack.c.bf16 %v995_v48, %v992_v47 }
 0x395   : > { %v1257_v53 = vpack.c.bf16 %v987_v51, %v984_v50 }
 0x396   : > { %1278 = vst [vmem:[%s1707_s16 + $0x28] sm:$0xff] %v1262_v52  }
 0x397   : > { %1277 = vst [vmem:[%s1707_s16 + $0x20] sm:$0xff] %v1257_v53   ;;  %v1450_v54 = vpop.f32.mrb[24].mxu1 }
 0x398   : > { %v999_v55 = vpop.f32.mrb[25].mxu1  ;;  %v1008_v57 = vadd.f32 %v1450_v54, %v868_v23 }
 0x399   : > { %v1451_v56 = vpop.f32.mrb[26].mxu1  ;;  %v1000_v60 = vadd.f32 %v999_v55, %v868_v23 }
 0x39a   : > { %v1011_v58 = vadd.f32 %v1451_v56, %v868_v23  ;;  %v1002_v59 = vpop.f32.mrb[27].mxu1 }
 0x39b   : > { %v1003_v61 = vadd.f32 %v1002_v59, %v868_v23 }
 0x39c   : > { %v1272_v62 = vpack.c.bf16 %v1011_v58, %v1008_v57 }
 0x39d   : > { %v1267_v63 = vpack.c.bf16 %v1003_v61, %v1000_v60 }
 0x39e   : > { %1280 = vst [vmem:[%s1707_s16 + $0x38] sm:$0xff] %v1272_v62  }
 0x39f   : > { %1279 = vst [vmem:[%s1707_s16 + $0x30] sm:$0xff] %v1267_v63  }
 0x3a0 PF: > { %s16_s21 = sadd.s32 1, %s1515_s21  }
 0x3a1   : > { %p13_p4 = scmp.ge.s32.totalorder %s16_s21, 6  }
 0x3a3   :  { %15 = sbr.rel (!%p13_p4) target bundleno = 1 (0x1), region = 74 }

</bundles_post_ra>
